<compile_context>
chip_gen: v6e
topology: v6e:2x2x1
jax: 0.10.0
libtpu: 0.0.40
codegen_flags: <defaults>
</compile_context>

<pallas_src>
import functools

import jax
import jax.numpy as jnp
from jax.experimental import pallas as pl
from jax.experimental.pallas import tpu as pltpu

HEAD_PAD = 128  # lane-dense padded head width (alpha lanes + value lane + zero pad)


def _round_up(x, m):
    return (x + m - 1) // m * m


def _allocation_kernel(num_outputs, x_ref, w1_ref, b1_ref, w2_ref, b2_ref,
                       wh_ref, bh_ref, out_ref):
    """Fused MLP + (alpha|value) head.  bf16 MXU inputs, f32 accumulate/VPU."""
    x = x_ref[...]                                                   # bf16 [TB, Kp]
    h1 = jnp.dot(x, w1_ref[...], preferred_element_type=jnp.float32) + b1_ref[...]
    h1 = jnp.maximum(h1, 0.0).astype(jnp.bfloat16)                   # ReLU (f32) -> bf16
    h2 = jnp.dot(h1, w2_ref[...], preferred_element_type=jnp.float32) + b2_ref[...]
    h2 = jnp.maximum(h2, 0.0).astype(jnp.bfloat16)                   # ReLU (f32) -> bf16
    head = jnp.dot(h2, wh_ref[...], preferred_element_type=jnp.float32) + bh_ref[...]
    # alpha lanes: softplus(a) + 1  (stable: logaddexp(a, 0)); value lane: raw.
    alpha_like = jnp.logaddexp(head, 0.0) + 1.0
    lane = jax.lax.broadcasted_iota(jnp.int32, head.shape, 1)
    out_ref[...] = jnp.where(lane < num_outputs, alpha_like, head)


def allocation_forward(obs_tensor, params, *, block_b=256):
    """obs_tensor: [B, obs_size] float32.  Returns (alpha [B,A], value [B,1])."""
    B, obs_size = obs_tensor.shape
    hidden = params["w1"].shape[1]
    num_outputs = params["wa"].shape[1]
    assert num_outputs + 1 <= HEAD_PAD

    k_pad = _round_up(obs_size, 128)
    tb = min(block_b, _round_up(B, 16))          # sublane-friendly batch tile
    b_pad = _round_up(B, tb)

    # --- pad / cast operands (lane-dense bf16 MXU inputs, f32 biases) ---
    x = jnp.zeros((b_pad, k_pad), jnp.bfloat16).at[:B, :obs_size].set(
        obs_tensor.astype(jnp.bfloat16))
    w1 = jnp.zeros((k_pad, hidden), jnp.bfloat16).at[:obs_size, :].set(
        params["w1"].astype(jnp.bfloat16))
    w2 = params["w2"].astype(jnp.bfloat16)
    b1 = params["b1"].astype(jnp.float32)
    b2 = params["b2"].astype(jnp.float32)
    # fused head weight/bias: [alpha | value | zeros]  -> one matmul, one slab
    wh = jnp.zeros((hidden, HEAD_PAD), jnp.bfloat16)
    wh = wh.at[:, :num_outputs].set(params["wa"].astype(jnp.bfloat16))
    wh = wh.at[:, num_outputs:num_outputs + 1].set(params["wv"].astype(jnp.bfloat16))
    bh = jnp.zeros((1, HEAD_PAD), jnp.float32)
    bh = bh.at[:, :num_outputs].set(params["ba"].astype(jnp.float32))
    bh = bh.at[:, num_outputs:num_outputs + 1].set(params["bv"].astype(jnp.float32))

    resident = lambda shape: pl.BlockSpec(shape, lambda i: (0, 0))

    out = pl.pallas_call(
        functools.partial(_allocation_kernel, num_outputs),
        out_shape=jax.ShapeDtypeStruct((b_pad, HEAD_PAD), jnp.float32),
        grid=(b_pad // tb,),
        in_specs=[
            pl.BlockSpec((tb, k_pad), lambda i: (i, 0)),      # x: tiled over batch
            resident((k_pad, hidden)), resident((1, hidden)),  # W1, b1 (VMEM-resident)
            resident((hidden, hidden)), resident((1, hidden)), # W2, b2
            resident((hidden, HEAD_PAD)), resident((1, HEAD_PAD)),  # fused head W, b
        ],
        out_specs=pl.BlockSpec((tb, HEAD_PAD), lambda i: (i, 0)),
        compiler_params=pltpu.CompilerParams(
            dimension_semantics=("parallel",),      # shard batch tiles across TCs
            vmem_limit_bytes=16 << 20),
    )(x, w1, b1, w2, b2, wh, bh)

    alpha = out[:B, :num_outputs]
    value = out[:B, num_outputs:num_outputs + 1]
    return alpha, value


def _reference_forward(obs_tensor, params):
    """Pure-JAX f32 reference of the PyTorch forward (for tolerance check)."""
    h1 = jnp.maximum(obs_tensor @ params["w1"] + params["b1"], 0.0)
    h2 = jnp.maximum(h1 @ params["w2"] + params["b2"], 0.0)
    alpha = jnp.logaddexp(h2 @ params["wa"] + params["ba"], 0.0) + 1.0
    value = h2 @ params["wv"] + params["bv"]
    return alpha, value


def init_params(key, obs_size, hidden, num_outputs):
    """Deterministic synthetic weights (PyTorch Linear shapes, stored transposed)."""
    ks = jax.random.split(key, 8)
    scale = 0.05
    return {
        "w1": scale * jax.random.normal(ks[0], (obs_size, hidden), jnp.float32),
        "b1": scale * jax.random.normal(ks[1], (1, hidden), jnp.float32),
        "w2": scale * jax.random.normal(ks[2], (hidden, hidden), jnp.float32),
        "b2": scale * jax.random.normal(ks[3], (1, hidden), jnp.float32),
        "wa": scale * jax.random.normal(ks[4], (hidden, num_outputs), jnp.float32),
        "ba": scale * jax.random.normal(ks[5], (1, num_outputs), jnp.float32),
        "wv": scale * jax.random.normal(ks[6], (hidden, 1), jnp.float32),
        "bv": scale * jax.random.normal(ks[7], (1, 1), jnp.float32),
    }


if __name__ == "__main__":
    key = jax.random.PRNGKey(0)
    k_obs, k_par, k_dir = jax.random.split(key, 3)

    # Small synthetic observation components (mirrors input_dict['obs'] dict).
    B = 2
    num_outputs = 8           # allocation dimension == action_mask size
    n_positions = 8
    n_specialist = 16

    k1, k2, k3, k4 = jax.random.split(k_obs, 4)
    action_mask = (jax.random.uniform(k1, (B, num_outputs)) > 0.3).astype(jnp.float32)
    cash_reserve = jax.random.uniform(k2, (B, 1), jnp.float32)
    open_positions = jax.random.uniform(k3, (B, n_positions), jnp.float32)
    specialist_actions = jax.random.normal(k4, (B, n_specialist), jnp.float32)

    # torch.cat([action_mask, cash_reserve, open_positions, specialist_actions], dim=-1)
    obs_tensor = jnp.concatenate(
        [action_mask, cash_reserve, open_positions, specialist_actions], axis=-1)
    obs_size = obs_tensor.shape[-1]            # = 8 + 1 + 8 + 16 = 33
    hidden = 512

    params = init_params(k_par, obs_size, hidden, num_outputs)

    alpha, value = allocation_forward(obs_tensor, params)
    jax.block_until_ready((alpha, value))

    # Tolerance check vs f32 reference (bf16 MXU inputs => small rounding).
    alpha_ref, value_ref = _reference_forward(obs_tensor, params)
    assert jnp.allclose(alpha, alpha_ref, rtol=3e-2, atol=3e-2)
    assert jnp.allclose(value, value_ref, rtol=3e-2, atol=3e-2)

    # Dirichlet(alpha).sample()  — Gamma rejection sampling stays in plain JAX.
    # TODO(synk): no clean Pallas equivalent for Gamma/Dirichlet rejection sampling.
    allocations = jax.random.dirichlet(k_dir, alpha)
    value_estimate = value.squeeze(-1)         # == value_function()
    jax.block_until_ready((allocations, value_estimate))

    assert alpha.shape == (B, num_outputs)
    assert allocations.shape == (B, num_outputs)
    assert value_estimate.shape == (B,)
    assert bool(jnp.all(alpha >= 1.0))
    assert bool(jnp.allclose(allocations.sum(-1), 1.0, atol=1e-5))

    print("KERNEL_OK")
</pallas_src>

<mosaic_0001>
module attributes {stable_mosaic.version = 11 : i64} {
  func.func @_allocation_kernel(%arg0: i32, %arg1: memref<16x128xbf16, #tpu.memory_space<vmem>>, %arg2: memref<128x512xbf16, #tpu.memory_space<vmem>>, %arg3: memref<1x512xf32, #tpu.memory_space<vmem>>, %arg4: memref<512x512xbf16, #tpu.memory_space<vmem>>, %arg5: memref<1x512xf32, #tpu.memory_space<vmem>>, %arg6: memref<512x128xbf16, #tpu.memory_space<vmem>>, %arg7: memref<1x128xf32, #tpu.memory_space<vmem>>, %arg8: memref<16x128xf32, #tpu.memory_space<vmem>>) attributes {dimension_semantics = [#tpu.dimension_semantics<parallel>], iteration_bounds = array<i64: 1>, scalar_prefetch = 0 : i64, scratch_operands = 0 : i64, tpu.core_type = #tpu.core_type<tc>, window_params = [{transform_indices = @transform_0, window_bounds = array<i64: 16, 128>}, {pipeline_mode = #tpu.pipeline_mode<synchronous>, transform_indices = @transform_1, window_bounds = array<i64: 128, 512>}, {pipeline_mode = #tpu.pipeline_mode<synchronous>, transform_indices = @transform_2, window_bounds = array<i64: 1, 512>}, {pipeline_mode = #tpu.pipeline_mode<synchronous>, transform_indices = @transform_3, window_bounds = array<i64: 512, 512>}, {pipeline_mode = #tpu.pipeline_mode<synchronous>, transform_indices = @transform_4, window_bounds = array<i64: 1, 512>}, {pipeline_mode = #tpu.pipeline_mode<synchronous>, transform_indices = @transform_5, window_bounds = array<i64: 512, 128>}, {pipeline_mode = #tpu.pipeline_mode<synchronous>, transform_indices = @transform_6, window_bounds = array<i64: 1, 128>}, {transform_indices = @transform_7, window_bounds = array<i64: 16, 128>}]} {
    %c0 = arith.constant 0 : index
    %c0_0 = arith.constant 0 : index
    %0 = vector.load %arg1[%c0, %c0_0] : memref<16x128xbf16, #tpu.memory_space<vmem>>, vector<16x128xbf16>
    %c0_1 = arith.constant 0 : index
    %c0_2 = arith.constant 0 : index
    %1 = vector.load %arg2[%c0_1, %c0_2] : memref<128x512xbf16, #tpu.memory_space<vmem>>, vector<128x512xbf16>
    %cst = arith.constant dense<0.000000e+00> : vector<16x512xf32>
    %2 = tpu.matmul %0, %1, %cst {dimension_numbers = #tpu.dot_dimension_numbers<[1], [0], [0], [1], [0, 0, 1, 1], [], []>} : vector<16x128xbf16>, vector<128x512xbf16>, vector<16x512xf32> -> vector<16x512xf32>
    %c0_3 = arith.constant 0 : index
    %c0_4 = arith.constant 0 : index
    %3 = vector.load %arg3[%c0_3, %c0_4] : memref<1x512xf32, #tpu.memory_space<vmem>>, vector<1x512xf32>
    %4 = vector.broadcast %3 : vector<1x512xf32> to vector<16x512xf32>
    %5 = arith.addf %2, %4 : vector<16x512xf32>
    %cst_5 = arith.constant 0.000000e+00 : f32
    %6 = vector.broadcast %cst_5 : f32 to vector<16x512xf32>
    %7 = arith.maximumf %5, %6 : vector<16x512xf32>
    %8 = arith.truncf %7 : vector<16x512xf32> to vector<16x512xbf16>
    %c0_6 = arith.constant 0 : index
    %c0_7 = arith.constant 0 : index
    %9 = vector.load %arg4[%c0_6, %c0_7] : memref<512x512xbf16, #tpu.memory_space<vmem>>, vector<512x512xbf16>
    %cst_8 = arith.constant dense<0.000000e+00> : vector<16x512xf32>
    %10 = tpu.matmul %8, %9, %cst_8 {dimension_numbers = #tpu.dot_dimension_numbers<[1], [0], [0], [1], [0, 0, 1, 1], [], []>} : vector<16x512xbf16>, vector<512x512xbf16>, vector<16x512xf32> -> vector<16x512xf32>
    %c0_9 = arith.constant 0 : index
    %c0_10 = arith.constant 0 : index
    %11 = vector.load %arg5[%c0_9, %c0_10] : memref<1x512xf32, #tpu.memory_space<vmem>>, vector<1x512xf32>
    %12 = vector.broadcast %11 : vector<1x512xf32> to vector<16x512xf32>
    %13 = arith.addf %10, %12 : vector<16x512xf32>
    %cst_11 = arith.constant 0.000000e+00 : f32
    %14 = vector.broadcast %cst_11 : f32 to vector<16x512xf32>
    %15 = arith.maximumf %13, %14 : vector<16x512xf32>
    %16 = arith.truncf %15 : vector<16x512xf32> to vector<16x512xbf16>
    %c0_12 = arith.constant 0 : index
    %c0_13 = arith.constant 0 : index
    %17 = vector.load %arg6[%c0_12, %c0_13] : memref<512x128xbf16, #tpu.memory_space<vmem>>, vector<512x128xbf16>
    %cst_14 = arith.constant dense<0.000000e+00> : vector<16x128xf32>
    %18 = tpu.matmul %16, %17, %cst_14 {dimension_numbers = #tpu.dot_dimension_numbers<[1], [0], [0], [1], [0, 0, 1, 1], [], []>} : vector<16x512xbf16>, vector<512x128xbf16>, vector<16x128xf32> -> vector<16x128xf32>
    %c0_15 = arith.constant 0 : index
    %c0_16 = arith.constant 0 : index
    %19 = vector.load %arg7[%c0_15, %c0_16] : memref<1x128xf32, #tpu.memory_space<vmem>>, vector<1x128xf32>
    %20 = vector.broadcast %19 : vector<1x128xf32> to vector<16x128xf32>
    %21 = arith.addf %18, %20 : vector<16x128xf32>
    %cst_17 = arith.constant 0.000000e+00 : f32
    %22 = vector.broadcast %cst_17 : f32 to vector<16x128xf32>
    %23 = arith.maximumf %21, %22 : vector<16x128xf32>
    %24 = vector.broadcast %cst_17 : f32 to vector<16x128xf32>
    %25 = arith.subf %21, %24 : vector<16x128xf32>
    %26 = arith.cmpf one, %25, %25 : vector<16x128xf32>
    %27 = vector.broadcast %cst_17 : f32 to vector<16x128xf32>
    %28 = arith.addf %21, %27 : vector<16x128xf32>
    %29 = math.absf %25 : vector<16x128xf32>
    %cst_18 = arith.constant 0.000000e+00 : f32
    %30 = vector.broadcast %cst_18 : f32 to vector<16x128xf32>
    %31 = arith.subf %30, %29 : vector<16x128xf32>
    %32 = math.exp %31 : vector<16x128xf32>
    %33 = math.log1p %32 : vector<16x128xf32>
    %34 = arith.addf %23, %33 : vector<16x128xf32>
    %35 = arith.select %26, %28, %34 : vector<16x128xi1>, vector<16x128xf32>
    %cst_19 = arith.constant 1.000000e+00 : f32
    %36 = vector.broadcast %cst_19 : f32 to vector<16x128xf32>
    %37 = arith.addf %35, %36 : vector<16x128xf32>
    %38 = tpu.iota {dimensions = array<i32: 1>} : vector<16x128xi32>
    %c8_i32 = arith.constant 8 : i32
    %39 = vector.broadcast %c8_i32 : i32 to vector<16x128xi32>
    %40 = arith.cmpi slt, %38, %39 : vector<16x128xi32>
    %41 = arith.select %40, %37, %21 : vector<16x128xi1>, vector<16x128xf32>
    %c0_20 = arith.constant 0 : index
    %c0_21 = arith.constant 0 : index
    %42 = vector.load %arg8[%c0_20, %c0_21] : memref<16x128xf32, #tpu.memory_space<vmem>>, vector<16x128xf32>
    tpu.vector_store %arg8[%c0_20, %c0_21], %41 {strides = array<i32>} : memref<16x128xf32, #tpu.memory_space<vmem>>, vector<16x128xf32>,
    return
  }
  func.func @transform_0(%arg0: i32) -> (i32, i32) {
    %c0_i32 = arith.constant 0 : i32
    %c0_i32_0 = arith.constant 0 : i32
    return %arg0, %c0_i32 : i32, i32
  }
  func.func @transform_1(%arg0: i32) -> (i32, i32) {
    %c0_i32 = arith.constant 0 : i32
    %c0_i32_0 = arith.constant 0 : i32
    %c0_i32_1 = arith.constant 0 : i32
    return %c0_i32, %c0_i32_0 : i32, i32
  }
  func.func @transform_2(%arg0: i32) -> (i32, i32) {
    %c0_i32 = arith.constant 0 : i32
    %c0_i32_0 = arith.constant 0 : i32
    %c0_i32_1 = arith.constant 0 : i32
    return %c0_i32, %c0_i32_0 : i32, i32
  }
  func.func @transform_3(%arg0: i32) -> (i32, i32) {
    %c0_i32 = arith.constant 0 : i32
    %c0_i32_0 = arith.constant 0 : i32
    %c0_i32_1 = arith.constant 0 : i32
    return %c0_i32, %c0_i32_0 : i32, i32
  }
  func.func @transform_4(%arg0: i32) -> (i32, i32) {
    %c0_i32 = arith.constant 0 : i32
    %c0_i32_0 = arith.constant 0 : i32
    %c0_i32_1 = arith.constant 0 : i32
    return %c0_i32, %c0_i32_0 : i32, i32
  }
  func.func @transform_5(%arg0: i32) -> (i32, i32) {
    %c0_i32 = arith.constant 0 : i32
    %c0_i32_0 = arith.constant 0 : i32
    %c0_i32_1 = arith.constant 0 : i32
    return %c0_i32, %c0_i32_0 : i32, i32
  }
  func.func @transform_6(%arg0: i32) -> (i32, i32) {
    %c0_i32 = arith.constant 0 : i32
    %c0_i32_0 = arith.constant 0 : i32
    %c0_i32_1 = arith.constant 0 : i32
    return %c0_i32, %c0_i32_0 : i32, i32
  }
  func.func @transform_7(%arg0: i32) -> (i32, i32) {
    %c0_i32 = arith.constant 0 : i32
    %c0_i32_0 = arith.constant 0 : i32
    return %arg0, %c0_i32 : i32, i32
  }
}

</mosaic_0001>

<bundles_post_ra>
// kernel: tpu_custom_call.1
= control target key start
LH: loop header
LB: loop body
LE: loop exit
PB: predicated region body
PF: predicated region fallthrough
CT: control target
= control target key end

     0   :  { %12 = vsyncpa [#allocation3], 0  ;;  %s2566_s0 = inlined_call_operand.hbm [shape: bf16[16,128], index: 0, kind: input, shape index: {}]   ;;  %s2567_s1 = inlined_call_operand.hbm [shape: bf16[128,512], index: 1, kind: input, shape index: {}]   ;;  %s2568_s2 = inlined_call_operand.hbm [shape: f32[1,512], index: 2, kind: input, shape index: {}]   ;;  %s2569_s3 = inlined_call_operand.hbm [shape: bf16[512,512], index: 3, kind: input, shape index: {}]   ;;  %s2570_s4 = inlined_call_operand.vmem [shape: f32[1,512], index: 4, kind: input, shape index: {}]   ;;  %s2571_s5 = inlined_call_operand.hbm [shape: bf16[512,128], index: 5, kind: input, shape index: {}]   ;;  %s2572_s6 = inlined_call_operand.vmem [shape: f32[1,128], index: 6, kind: input, shape index: {}]   ;;  %s2573_s7 = inlined_call_operand.hbm [shape: f32[16,128], index: 7, kind: output, shape index: {}]  }
   0x1   :  { %13 = vsyncpa [#allocation6], 0 }
   0x2   :  { %14 = vsyncpa [#allocation9], 0 }
   0x3   :  { %15 = vsyncpa [#allocation4], 0  ;;  %s2457_s24 = smov [#allocation5]  }
   0x4   :  { %s33_s25 = sshll.u32 %s2457_s24, 4  ;;  %s34_s25 = int_to_ptr.vmem [resolvable:$true] %s33_s25 }
   0x5   :  { %s2337_s26 = scalar_lea.vmem %s34_s25, 4096  ;;  %p2342_p1 = scmp.lt.s32.totalorder %s34_s25, %s34_s25 }
   0x6   :  { %p2338_p0 = scmp.ne.s32.totalorder %s34_s25, %s2337_s26  ;;  %p2343_p2 = scmp.lt.s32.totalorder %s2337_s26, %s2337_s26 }
   0x8   :  { %p2344_p3 = por %p2343_p2, %p2342_p1 }
   0xa   :  { %p2345_p4 = pnand %p2344_p3, %p2338_p0 }
   0xc   :  { %2348 = shalt.err (!%p2345_p4)
}
   0xd   :  { %s2458_s27 = smov 256   ;;  %s2459_s28 = smov 16  }
   0xe   :  { %39 = dma.hbm_to_vmem [thread:$0]  %s2567_s1, 4096, %s34_s25, [#allocation6], %s2458_s27, %s2458_s27, %s2459_s28  }
   0xf   :  { %s2460_s8 = smov [#allocation8]   ;;  %s2461_s10 = smov [#allocation2]  }
  0x10   :  { %s55_s9 = sshll.u32 %s2460_s8, 4  ;;  %s21_s11 = sshll.u32 %s2461_s10, 4  ;;  %s56_s9 = int_to_ptr.vmem [resolvable:$true] %s55_s9  ;;  %s22_s11 = int_to_ptr.vmem [resolvable:$true] %s21_s11 }
  0x11   :  { %s2357_s12 = scalar_lea.vmem %s56_s9, 16384  ;;  %p2362_p6 = scmp.lt.s32.totalorder %s56_s9, %s56_s9 }
  0x12   :  { %p2358_p5 = scmp.ne.s32.totalorder %s56_s9, %s2357_s12  ;;  %p2363_p7 = scmp.lt.s32.totalorder %s2357_s12, %s2357_s12 }
  0x14   :  { %p2364_p8 = por %p2363_p7, %p2362_p6 }
  0x16   :  { %p2365_p9 = pnand %p2364_p8, %p2358_p5 }
  0x18   :  { %2368 = shalt.err (!%p2365_p9)
}
  0x19   :  { %61 = dma.hbm_to_vmem [thread:$0]  %s2569_s3, 16384, %s56_s9, [#allocation9], %s2458_s27, %s2458_s27, %s2459_s28  }
  0x1a   :  { %s2377_s15 = scalar_lea.vmem %s22_s11, 128  ;;  %p2382_p11 = scmp.lt.s32.totalorder %s22_s11, %s22_s11 }
  0x1b   :  { %p2378_p10 = scmp.ne.s32.totalorder %s22_s11, %s2377_s15  ;;  %p2383_p12 = scmp.lt.s32.totalorder %s2377_s15, %s2377_s15 }
  0x1d   :  { %p2384_p13 = por %p2383_p12, %p2382_p11 }
  0x1f   :  { %p2385_p0 = pnand %p2384_p13, %p2378_p10 }
  0x21   :  { %2388 = shalt.err (!%p2385_p0)
}
  0x22   :  { %s2462_s1 = smov 64   ;;  %s2463_s16 = smov 4  }
  0x23   :  { %27 = dma.hbm_to_vmem [thread:$0]  %s2566_s0, 128, %s22_s11, [#allocation3], %s2462_s1, %s2462_s1, %s2463_s16  }
  0x24   :  { %s2464_s19 = smov [#allocation7]   ;;  %s2465_s21 = smov [#allocation10]  }
  0x25   :  { %s46_s20 = sshll.u32 %s2464_s19, 4  ;;  %s69_s22 = sshll.u32 %s2465_s21, 4  ;;  %s47_s20 = int_to_ptr.vmem [resolvable:$true] %s46_s20  ;;  %s70_s22 = int_to_ptr.vmem [resolvable:$true] %s69_s22 }
  0x26   :  { %s2397_s3 = scalar_lea.vmem %s47_s20, 64  ;;  %p2402_p2 = scmp.lt.s32.totalorder %s47_s20, %s47_s20 }
  0x27   :  { %p2398_p1 = scmp.ne.s32.totalorder %s47_s20, %s2397_s3  ;;  %p2403_p3 = scmp.lt.s32.totalorder %s2397_s3, %s2397_s3 }
  0x29   :  { %p2404_p4 = por %p2403_p3, %p2402_p2 }
  0x2b   :  { %p2405_p5 = pnand %p2404_p4, %p2398_p1 }
  0x2d   :  { %2408 = shalt.err (!%p2405_p5)
}
  0x2e   :  { %49 = dma.hbm_to_vmem [thread:$0]  %s2568_s2, 64, %s47_s20, [#allocation6]  }
  0x2f   :  { %s2417_s25 = scalar_lea.vmem %s70_s22, 4096  ;;  %p2422_p7 = scmp.lt.s32.totalorder %s70_s22, %s70_s22 }
  0x30   :  { %p2418_p6 = scmp.ne.s32.totalorder %s70_s22, %s2417_s25  ;;  %p2423_p8 = scmp.lt.s32.totalorder %s2417_s25, %s2417_s25 }
  0x32   :  { %p2424_p9 = por %p2423_p8, %p2422_p7 }
  0x34   :  { %p2425_p10 = pnand %p2424_p9, %p2418_p6 }
  0x36   :  { %2428 = shalt.err (!%p2425_p10)
}
  0x37   :  { %75 = dma.hbm_to_vmem [thread:$0]  %s2571_s5, 4096, %s70_s22, [#allocation9], %s2462_s1, %s2462_s1, %s2463_s16  }
  0x38   :  { %2449 = dma.done.wait [#allocation3], 128  }
  0x39   :  { %2450 = vsyncadd [#allocation3], 4294967168 }
  0x3a   :  { %2451 = dma.done.wait [#allocation6], 4160  }
  0x3b   :  { %2452 = vsyncadd [#allocation6], 4294963136 }
  0x3c   :  { %2453 = dma.done.wait [#allocation9], 20480  }
  0x3d   :  { %2454 = vsyncadd [#allocation9], 4294946816  ;;  %v2466_v0 = vmov 0   ;;  %v2048_v1 = vld [vmem:[#allocation5 + $0xe4] ss:$16 sps:$4 sm:$0xff]   ;;  %v2096_v35 = vld [vmem:[#allocation2] sm:$0xff]  }
  0x3e   :  { %348 = vmatprep.mubr.bf16.mxu0 %v2466_v0  ;;  %391 = vmatprep.mubr.bf16.mxu1 %v2466_v0  ;;  %v2050_v2 = vld [vmem:[#allocation5 + $0xec] ss:$16 sps:$4 sm:$0xff]   ;;  %v2052_v3 = vld [vmem:[#allocation5 + $0xe0] ss:$16 sps:$4 sm:$0xff]   ;;  %v2053_v4 = vld [vmem:[#allocation5 + $0xe8] ss:$16 sps:$4 sm:$0xff]  }
  0x3f   :  { %316 = vmatprep.subr.bf16.mxu0 %v2048_v1  ;;  %359 = vmatprep.subr.bf16.mxu1 %v2050_v2  ;;  %v2054_v5 = vld [vmem:[#allocation5 + $0xc4] ss:$16 sps:$4 sm:$0xff]   ;;  %v2056_v6 = vld [vmem:[#allocation5 + $0xcc] ss:$16 sps:$4 sm:$0xff]   ;;  %v2058_v7 = vld [vmem:[#allocation5 + $0xc0] ss:$16 sps:$4 sm:$0xff]  }
  0x40   :  { %317 = vmatpush1.bf16.msra.mxu0 %v2052_v3  ;;  %360 = vmatpush1.bf16.msra.mxu1 %v2053_v4  ;;  %v2059_v8 = vld [vmem:[#allocation5 + $0xc8] ss:$16 sps:$4 sm:$0xff]   ;;  %v2060_v9 = vld [vmem:[#allocation5 + $0xa4] ss:$16 sps:$4 sm:$0xff]   ;;  %v2062_v10 = vld [vmem:[#allocation5 + $0xac] ss:$16 sps:$4 sm:$0xff]  }
  0x41   :  { %318 = vmatprep.subr.bf16.mxu0 %v2054_v5  ;;  %361 = vmatprep.subr.bf16.mxu1 %v2056_v6  ;;  %v2064_v11 = vld [vmem:[#allocation5 + $0xa0] ss:$16 sps:$4 sm:$0xff]   ;;  %v2065_v12 = vld [vmem:[#allocation5 + $0xa8] ss:$16 sps:$4 sm:$0xff]   ;;  %v2066_v13 = vld [vmem:[#allocation5 + $0x84] ss:$16 sps:$4 sm:$0xff]  }
  0x42   :  { %v2068_v14 = vld [vmem:[#allocation5 + $0x8c] ss:$16 sps:$4 sm:$0xff]   ;;  %v2070_v15 = vld [vmem:[#allocation5 + $0x80] ss:$16 sps:$4 sm:$0xff]   ;;  %v2071_v16 = vld [vmem:[#allocation5 + $0x88] ss:$16 sps:$4 sm:$0xff]  }
  0x43   :  { %v2072_v17 = vld [vmem:[#allocation5 + $0x64] ss:$16 sps:$4 sm:$0xff]   ;;  %v2074_v18 = vld [vmem:[#allocation5 + $0x6c] ss:$16 sps:$4 sm:$0xff]   ;;  %v2076_v19 = vld [vmem:[#allocation5 + $0x60] ss:$16 sps:$4 sm:$0xff]  }
  0x44   :  { %319 = vmatpush1.bf16.msra.mxu0 %v2058_v7  ;;  %362 = vmatpush1.bf16.msra.mxu1 %v2059_v8  ;;  %v2077_v20 = vld [vmem:[#allocation5 + $0x68] ss:$16 sps:$4 sm:$0xff]   ;;  %v2078_v21 = vld [vmem:[#allocation5 + $0x44] ss:$16 sps:$4 sm:$0xff]   ;;  %v2080_v22 = vld [vmem:[#allocation5 + $0x4c] ss:$16 sps:$4 sm:$0xff]  }
  0x45   :  { %320 = vmatprep.subr.bf16.mxu0 %v2060_v9  ;;  %363 = vmatprep.subr.bf16.mxu1 %v2062_v10  ;;  %v2082_v23 = vld [vmem:[#allocation5 + $0x40] ss:$16 sps:$4 sm:$0xff]   ;;  %v2083_v24 = vld [vmem:[#allocation5 + $0x48] ss:$16 sps:$4 sm:$0xff]   ;;  %v2084_v25 = vld [vmem:[#allocation5 + $0x24] ss:$16 sps:$4 sm:$0xff]  }
  0x46   :  { %v2086_v26 = vld [vmem:[#allocation5 + $0x2c] ss:$16 sps:$4 sm:$0xff]   ;;  %v2088_v27 = vld [vmem:[#allocation5 + $0x20] ss:$16 sps:$4 sm:$0xff]   ;;  %v2089_v28 = vld [vmem:[#allocation5 + $0x28] ss:$16 sps:$4 sm:$0xff]  }
  0x47   :  { %v2090_v29 = vld [vmem:[#allocation5 + $0x4] ss:$16 sps:$4 sm:$0xff]   ;;  %v2092_v30 = vld [vmem:[#allocation5 + $0xc] ss:$16 sps:$4 sm:$0xff]   ;;  %v2094_v31 = vld [vmem:[#allocation5] ss:$16 sps:$4 sm:$0xff]  }
  0x48   :  { %321 = vmatpush1.bf16.msra.mxu0 %v2064_v11  ;;  %364 = vmatpush1.bf16.msra.mxu1 %v2065_v12  ;;  %v2095_v32 = vld [vmem:[#allocation5 + $0x8] ss:$16 sps:$4 sm:$0xff]   ;;  %v2097_v36 = vld [vmem:[#allocation8 + $0xe0] ss:$16 sps:$4 sm:$0xff]  }
  0x49   :  { %322 = vmatprep.subr.bf16.mxu0 %v2066_v13  ;;  %365 = vmatprep.subr.bf16.mxu1 %v2068_v14  ;;  %v2099_v33 = vld [vmem:[#allocation8 + $0xe4] ss:$16 sps:$4 sm:$0xff]   ;;  %v2100_v37 = vld [vmem:[#allocation8 + $0x2e0] ss:$16 sps:$4 sm:$0xff]  }
  0x4a   :  { %v2102_v34 = vld [vmem:[#allocation8 + $0x2e4] ss:$16 sps:$4 sm:$0xff]   ;;  %v2103_v40 = vld [vmem:[#allocation8 + $0xc0] ss:$16 sps:$4 sm:$0xff]  }
  0x4b   :  { %v2105_v38 = vld [vmem:[#allocation8 + $0xc4] ss:$16 sps:$4 sm:$0xff]   ;;  %v2106_v41 = vld [vmem:[#allocation8 + $0x2c0] ss:$16 sps:$4 sm:$0xff]  }
  0x4c   :  { %323 = vmatpush1.bf16.msra.mxu0 %v2070_v15  ;;  %366 = vmatpush1.bf16.msra.mxu1 %v2071_v16  ;;  %v2108_v39 = vld [vmem:[#allocation8 + $0x2c4] ss:$16 sps:$4 sm:$0xff]   ;;  %v2109_v44 = vld [vmem:[#allocation8 + $0xa0] ss:$16 sps:$4 sm:$0xff]  }
  0x4d   :  { %324 = vmatprep.subr.bf16.mxu0 %v2072_v17  ;;  %367 = vmatprep.subr.bf16.mxu1 %v2074_v18  ;;  %v2111_v42 = vld [vmem:[#allocation8 + $0xa4] ss:$16 sps:$4 sm:$0xff]   ;;  %v2112_v45 = vld [vmem:[#allocation8 + $0x2a0] ss:$16 sps:$4 sm:$0xff]  }
  0x4e   :  { %v2114_v43 = vld [vmem:[#allocation8 + $0x2a4] ss:$16 sps:$4 sm:$0xff]   ;;  %v2115_v48 = vld [vmem:[#allocation8 + $0x80] ss:$16 sps:$4 sm:$0xff]  }
  0x4f   :  { %v2117_v46 = vld [vmem:[#allocation8 + $0x84] ss:$16 sps:$4 sm:$0xff]   ;;  %v2118_v49 = vld [vmem:[#allocation8 + $0x280] ss:$16 sps:$4 sm:$0xff]  }
  0x50   :  { %325 = vmatpush1.bf16.msra.mxu0 %v2076_v19  ;;  %368 = vmatpush1.bf16.msra.mxu1 %v2077_v20  ;;  %v2120_v47 = vld [vmem:[#allocation8 + $0x284] ss:$16 sps:$4 sm:$0xff]   ;;  %v2121_v52 = vld [vmem:[#allocation8 + $0x60] ss:$16 sps:$4 sm:$0xff]  }
  0x51   :  { %326 = vmatprep.subr.bf16.mxu0 %v2078_v21  ;;  %369 = vmatprep.subr.bf16.mxu1 %v2080_v22  ;;  %v2123_v50 = vld [vmem:[#allocation8 + $0x64] ss:$16 sps:$4 sm:$0xff]   ;;  %v2124_v53 = vld [vmem:[#allocation8 + $0x260] ss:$16 sps:$4 sm:$0xff]  }
  0x52   :  { %v2126_v51 = vld [vmem:[#allocation8 + $0x264] ss:$16 sps:$4 sm:$0xff]   ;;  %v2127_v56 = vld [vmem:[#allocation8 + $0x40] ss:$16 sps:$4 sm:$0xff]  }
  0x53   :  { %v2129_v54 = vld [vmem:[#allocation8 + $0x44] ss:$16 sps:$4 sm:$0xff]   ;;  %v2130_v57 = vld [vmem:[#allocation8 + $0x240] ss:$16 sps:$4 sm:$0xff]  }
  0x54   :  { %327 = vmatpush1.bf16.msra.mxu0 %v2082_v23  ;;  %370 = vmatpush1.bf16.msra.mxu1 %v2083_v24  ;;  %v2132_v55 = vld [vmem:[#allocation8 + $0x244] ss:$16 sps:$4 sm:$0xff]   ;;  %v2133_v60 = vld [vmem:[#allocation8 + $0x20] ss:$16 sps:$4 sm:$0xff]  }
  0x55   :  { %328 = vmatprep.subr.bf16.mxu0 %v2084_v25  ;;  %371 = vmatprep.subr.bf16.mxu1 %v2086_v26  ;;  %v2135_v58 = vld [vmem:[#allocation8 + $0x24] ss:$16 sps:$4 sm:$0xff]   ;;  %v2136_v61 = vld [vmem:[#allocation8 + $0x220] ss:$16 sps:$4 sm:$0xff]  }
  0x56   :  { %v2138_v59 = vld [vmem:[#allocation8 + $0x224] ss:$16 sps:$4 sm:$0xff]   ;;  %v2139_v0 = vld [vmem:[#allocation8] ss:$16 sps:$4 sm:$0xff]  }
  0x57   :  { %v2141_v62 = vld [vmem:[#allocation8 + $0x4] ss:$16 sps:$4 sm:$0xff]   ;;  %v2142_v1 = vld [vmem:[#allocation8 + $0x200] ss:$16 sps:$4 sm:$0xff]  }
  0x58   :  { %329 = vmatpush1.bf16.msra.mxu0 %v2088_v27  ;;  %372 = vmatpush1.bf16.msra.mxu1 %v2089_v28  ;;  %v2144_v63 = vld [vmem:[#allocation8 + $0x204] ss:$16 sps:$4 sm:$0xff]   ;;  %v2145_v4 = vld [vmem:[#allocation8 + $0x1e0] ss:$16 sps:$4 sm:$0xff]  }
  0x59   :  { %330 = vmatprep.subr.bf16.mxu0 %v2090_v29  ;;  %373 = vmatprep.subr.bf16.mxu1 %v2092_v30  ;;  %v2147_v2 = vld [vmem:[#allocation8 + $0x1e4] ss:$16 sps:$4 sm:$0xff]   ;;  %v2148_v5 = vld [vmem:[#allocation8 + $0x3e0] ss:$16 sps:$4 sm:$0xff]  }
  0x5a   :  { %v2150_v3 = vld [vmem:[#allocation8 + $0x3e4] ss:$16 sps:$4 sm:$0xff]   ;;  %v2151_v8 = vld [vmem:[#allocation8 + $0x1c0] ss:$16 sps:$4 sm:$0xff]  }
  0x5b   :  { %v2153_v6 = vld [vmem:[#allocation8 + $0x1c4] ss:$16 sps:$4 sm:$0xff]   ;;  %v2154_v9 = vld [vmem:[#allocation8 + $0x3c0] ss:$16 sps:$4 sm:$0xff]  }
  0x5c   :  { %331 = vmatpush1.bf16.msra.mxu0 %v2094_v31  ;;  %374 = vmatpush1.bf16.msra.mxu1 %v2095_v32  ;;  %v2156_v7 = vld [vmem:[#allocation8 + $0x3c4] ss:$16 sps:$4 sm:$0xff]   ;;  %v2157_v12 = vld [vmem:[#allocation8 + $0x1a0] ss:$16 sps:$4 sm:$0xff]  }
  0x5d   :  { %1204 = vmatprep.subr.bf16.mxu0 %v2099_v33  ;;  %1247 = vmatprep.subr.bf16.mxu1 %v2102_v34  ;;  %v2159_v10 = vld [vmem:[#allocation8 + $0x1a4] ss:$16 sps:$4 sm:$0xff]   ;;  %v2160_v13 = vld [vmem:[#allocation8 + $0x3a0] ss:$16 sps:$4 sm:$0xff]   ;;  %v2195_v34 = vld [vmem:[#allocation8 + $0xec] ss:$16 sps:$4 sm:$0xff]  }
  0x5e   :  { %v2162_v11 = vld [vmem:[#allocation8 + $0x3a4] ss:$16 sps:$4 sm:$0xff]   ;;  %v2163_v16 = vld [vmem:[#allocation8 + $0x180] ss:$16 sps:$4 sm:$0xff]  }
  0x5f   :  { %349 = vmatmul.mubr.bf16.vlgmr.msra.gmra.mxu0 %v2096_v35  ;;  %392 = vmatmul.mubr.bf16.vlgmr.msra.gmra.mxu1 %v2096_v35  ;;  %v2165_v14 = vld [vmem:[#allocation8 + $0x184] ss:$16 sps:$4 sm:$0xff]   ;;  %v2166_v17 = vld [vmem:[#allocation8 + $0x380] ss:$16 sps:$4 sm:$0xff]   ;;  %v2198_v35 = vld [vmem:[#allocation8 + $0x2ec] ss:$16 sps:$4 sm:$0xff]  }
  0x60   :  { %1205 = vmatpush1.bf16.msra.mxu0 %v2097_v36  ;;  %1248 = vmatpush1.bf16.msra.mxu1 %v2100_v37  ;;  %v2168_v15 = vld [vmem:[#allocation8 + $0x384] ss:$16 sps:$4 sm:$0xff]   ;;  %v2169_v20 = vld [vmem:[#allocation8 + $0x160] ss:$16 sps:$4 sm:$0xff]   ;;  %v130_v36 = vlaneseq }
  0x61   :  { %1206 = vmatprep.subr.bf16.mxu0 %v2105_v38  ;;  %1249 = vmatprep.subr.bf16.mxu1 %v2108_v39  ;;  %v2171_v18 = vld [vmem:[#allocation8 + $0x164] ss:$16 sps:$4 sm:$0xff]   ;;  %v2172_v21 = vld [vmem:[#allocation8 + $0x360] ss:$16 sps:$4 sm:$0xff]  }
  0x62   :  { %v2174_v19 = vld [vmem:[#allocation8 + $0x364] ss:$16 sps:$4 sm:$0xff]   ;;  %v2175_v24 = vld [vmem:[#allocation8 + $0x140] ss:$16 sps:$4 sm:$0xff]   ;;  %v2526_v37 = vshrl.u32 %v130_v36, 7 }
  0x63   :  { %v2177_v22 = vld [vmem:[#allocation8 + $0x144] ss:$16 sps:$4 sm:$0xff]   ;;  %v2178_v25 = vld [vmem:[#allocation8 + $0x340] ss:$16 sps:$4 sm:$0xff]  }
  0x64   :  { %1207 = vmatpush1.bf16.msra.mxu0 %v2103_v40  ;;  %1250 = vmatpush1.bf16.msra.mxu1 %v2106_v41  ;;  %v2180_v23 = vld [vmem:[#allocation8 + $0x344] ss:$16 sps:$4 sm:$0xff]   ;;  %v2181_v28 = vld [vmem:[#allocation8 + $0x120] ss:$16 sps:$4 sm:$0xff]   ;;  %v136_v38 = vsub.s32 1, %v2526_v37  ;;  %v144_v39 = vsub.s32 3, %v2526_v37 }
  0x65   :  { %1208 = vmatprep.subr.bf16.mxu0 %v2111_v42  ;;  %1251 = vmatprep.subr.bf16.mxu1 %v2114_v43  ;;  %v2183_v26 = vld [vmem:[#allocation8 + $0x124] ss:$16 sps:$4 sm:$0xff]   ;;  %v2184_v29 = vld [vmem:[#allocation8 + $0x320] ss:$16 sps:$4 sm:$0xff]   ;;  %v132_v40 = vsub.s32 0, %v2526_v37  ;;  %v140_v41 = vsub.s32 2, %v2526_v37 }
  0x66   :  { %v2186_v27 = vld [vmem:[#allocation8 + $0x324] ss:$16 sps:$4 sm:$0xff]   ;;  %v2187_v32 = vld [vmem:[#allocation8 + $0x100] ss:$16 sps:$4 sm:$0xff]   ;;  %v128_v42 = vld [vmem:[#allocation7] sm:$0xf] }
  0x67   :  { %v2189_v30 = vld [vmem:[#allocation8 + $0x104] ss:$16 sps:$4 sm:$0xff]   ;;  %v2190_v33 = vld [vmem:[#allocation8 + $0x300] ss:$16 sps:$4 sm:$0xff]  }
  0x68   :  { %1209 = vmatpush1.bf16.msra.mxu0 %v2109_v44  ;;  %1252 = vmatpush1.bf16.msra.mxu1 %v2112_v45  ;;  %v2192_v31 = vld [vmem:[#allocation8 + $0x304] ss:$16 sps:$4 sm:$0xff]   ;;  %v137_v45 = vrot.slane %v128_v42, %v136_v38 }
  0x69   :  { %1210 = vmatprep.subr.bf16.mxu0 %v2117_v46  ;;  %1253 = vmatprep.subr.bf16.mxu1 %v2120_v47  ;;  %v145_v46 = vrot.slane %v128_v42, %v144_v39  ;;  %v133_v47 = vrot.slane %v128_v42, %v132_v40 }
  0x6c   :  { %1211 = vmatpush1.bf16.msra.mxu0 %v2115_v48  ;;  %1254 = vmatpush1.bf16.msra.mxu1 %v2118_v49  ;;  %v141_v48 = vrot.slane %v128_v42, %v140_v41  ;;  %v2232_v42 = vld [vmem:[#allocation8 + $0x228] ss:$16 sps:$4 sm:$0xff]  }
  0x6d   :  { %1212 = vmatprep.subr.bf16.mxu0 %v2123_v50  ;;  %1255 = vmatprep.subr.bf16.mxu1 %v2126_v51 }
  0x70   :  { %1213 = vmatpush1.bf16.msra.mxu0 %v2121_v52  ;;  %1256 = vmatpush1.bf16.msra.mxu1 %v2124_v53 }
  0x71   :  { %1214 = vmatprep.subr.bf16.mxu0 %v2129_v54  ;;  %1257 = vmatprep.subr.bf16.mxu1 %v2132_v55 }
  0x74   :  { %1215 = vmatpush1.bf16.msra.mxu0 %v2127_v56  ;;  %1258 = vmatpush1.bf16.msra.mxu1 %v2130_v57 }
  0x75   :  { %1216 = vmatprep.subr.bf16.mxu0 %v2135_v58  ;;  %1259 = vmatprep.subr.bf16.mxu1 %v2138_v59 }
  0x78   :  { %1217 = vmatpush1.bf16.msra.mxu0 %v2133_v60  ;;  %1260 = vmatpush1.bf16.msra.mxu1 %v2136_v61 }
  0x79   :  { %1218 = vmatprep.subr.bf16.mxu0 %v2141_v62  ;;  %1261 = vmatprep.subr.bf16.mxu1 %v2144_v63 }
  0x7c   :  { %1219 = vmatpush1.bf16.msra.mxu0 %v2139_v0  ;;  %1262 = vmatpush1.bf16.msra.mxu1 %v2142_v1 }
  0x7d   :  { %1220 = vmatprep.subr.bf16.mxu0 %v2147_v2  ;;  %1263 = vmatprep.subr.bf16.mxu1 %v2150_v3 }
  0x80   :  { %1221 = vmatpush2.bf16.msra.mxu0 %v2145_v4  ;;  %1264 = vmatpush2.bf16.msra.mxu1 %v2148_v5 }
  0x81   :  { %1222 = vmatprep.subr.bf16.mxu0 %v2153_v6  ;;  %1265 = vmatprep.subr.bf16.mxu1 %v2156_v7 }
  0x84   :  { %1223 = vmatpush2.bf16.msra.mxu0 %v2151_v8  ;;  %1266 = vmatpush2.bf16.msra.mxu1 %v2154_v9  ;;  %v2193_v9 = vld [vmem:[#allocation8 + $0xe8] ss:$16 sps:$4 sm:$0xff]  }
  0x85   :  { %1224 = vmatprep.subr.bf16.mxu0 %v2159_v10  ;;  %1267 = vmatprep.subr.bf16.mxu1 %v2162_v11  ;;  %v2196_v10 = vld [vmem:[#allocation8 + $0x2e8] ss:$16 sps:$4 sm:$0xff]  }
  0x88   :  { %1225 = vmatpush2.bf16.msra.mxu0 %v2157_v12  ;;  %1268 = vmatpush2.bf16.msra.mxu1 %v2160_v13  ;;  %v2201_v13 = vld [vmem:[#allocation8 + $0xcc] ss:$16 sps:$4 sm:$0xff]  }
  0x89   :  { %1226 = vmatprep.subr.bf16.mxu0 %v2165_v14  ;;  %1269 = vmatprep.subr.bf16.mxu1 %v2168_v15  ;;  %v2204_v14 = vld [vmem:[#allocation8 + $0x2cc] ss:$16 sps:$4 sm:$0xff]   ;;  %v2199_v15 = vld [vmem:[#allocation8 + $0xc8] ss:$16 sps:$4 sm:$0xff]  }
  0x8c   :  { %1227 = vmatpush2.bf16.msra.mxu0 %v2163_v16  ;;  %1270 = vmatpush2.bf16.msra.mxu1 %v2166_v17  ;;  %v2202_v16 = vld [vmem:[#allocation8 + $0x2c8] ss:$16 sps:$4 sm:$0xff]   ;;  %v2207_v17 = vld [vmem:[#allocation8 + $0xac] ss:$16 sps:$4 sm:$0xff]  }
  0x8d   :  { %1228 = vmatprep.subr.bf16.mxu0 %v2171_v18  ;;  %1271 = vmatprep.subr.bf16.mxu1 %v2174_v19  ;;  %v2210_v18 = vld [vmem:[#allocation8 + $0x2ac] ss:$16 sps:$4 sm:$0xff]   ;;  %v2205_v19 = vld [vmem:[#allocation8 + $0xa8] ss:$16 sps:$4 sm:$0xff]  }
  0x90   :  { %1229 = vmatpush2.bf16.msra.mxu0 %v2169_v20  ;;  %1272 = vmatpush2.bf16.msra.mxu1 %v2172_v21  ;;  %v2208_v20 = vld [vmem:[#allocation8 + $0x2a8] ss:$16 sps:$4 sm:$0xff]   ;;  %v2213_v21 = vld [vmem:[#allocation8 + $0x8c] ss:$16 sps:$4 sm:$0xff]  }
  0x91   :  { %1230 = vmatprep.subr.bf16.mxu0 %v2177_v22  ;;  %1273 = vmatprep.subr.bf16.mxu1 %v2180_v23  ;;  %v2216_v22 = vld [vmem:[#allocation8 + $0x28c] ss:$16 sps:$4 sm:$0xff]   ;;  %v2211_v23 = vld [vmem:[#allocation8 + $0x88] ss:$16 sps:$4 sm:$0xff]  }
  0x94   :  { %1231 = vmatpush2.bf16.msra.mxu0 %v2175_v24  ;;  %1274 = vmatpush2.bf16.msra.mxu1 %v2178_v25  ;;  %v2214_v24 = vld [vmem:[#allocation8 + $0x288] ss:$16 sps:$4 sm:$0xff]   ;;  %v2219_v25 = vld [vmem:[#allocation8 + $0x6c] ss:$16 sps:$4 sm:$0xff]  }
  0x95   :  { %1232 = vmatprep.subr.bf16.mxu0 %v2183_v26  ;;  %1275 = vmatprep.subr.bf16.mxu1 %v2186_v27  ;;  %v2222_v26 = vld [vmem:[#allocation8 + $0x26c] ss:$16 sps:$4 sm:$0xff]   ;;  %v2217_v27 = vld [vmem:[#allocation8 + $0x68] ss:$16 sps:$4 sm:$0xff]  }
  0x98   :  { %1233 = vmatpush2.bf16.msra.mxu0 %v2181_v28  ;;  %1276 = vmatpush2.bf16.msra.mxu1 %v2184_v29  ;;  %v2220_v28 = vld [vmem:[#allocation8 + $0x268] ss:$16 sps:$4 sm:$0xff]   ;;  %v2225_v29 = vld [vmem:[#allocation8 + $0x4c] ss:$16 sps:$4 sm:$0xff]  }
  0x99   :  { %1234 = vmatprep.subr.bf16.mxu0 %v2189_v30  ;;  %1277 = vmatprep.subr.bf16.mxu1 %v2192_v31  ;;  %v2228_v30 = vld [vmem:[#allocation8 + $0x24c] ss:$16 sps:$4 sm:$0xff]   ;;  %v2223_v31 = vld [vmem:[#allocation8 + $0x48] ss:$16 sps:$4 sm:$0xff]  }
  0x9c   :  { %1235 = vmatpush2.bf16.msra.mxu0 %v2187_v32  ;;  %1278 = vmatpush2.bf16.msra.mxu1 %v2190_v33  ;;  %v2226_v32 = vld [vmem:[#allocation8 + $0x248] ss:$16 sps:$4 sm:$0xff]   ;;  %v2231_v33 = vld [vmem:[#allocation8 + $0x2c] ss:$16 sps:$4 sm:$0xff]  }
  0x9d   :  { %1290 = vmatprep.subr.bf16.mxu0 %v2195_v34  ;;  %1333 = vmatprep.subr.bf16.mxu1 %v2198_v35  ;;  %v2234_v34 = vld [vmem:[#allocation8 + $0x22c] ss:$16 sps:$4 sm:$0xff]   ;;  %v2229_v35 = vld [vmem:[#allocation8 + $0x28] ss:$16 sps:$4 sm:$0xff]  }
 0x11f   :  { %v350_v43 = vpop.f32.mrf.mxu0  ;;  %v393_v44 = vpop.f32.mrf.mxu1 }
 0x120   :  { %v351_v57 = vadd.f32 %v350_v43, %v133_v47  ;;  %v394_v58 = vadd.f32 %v393_v44, %v141_v48  ;;  %v2237_v43 = vld [vmem:[#allocation8 + $0xc] ss:$16 sps:$4 sm:$0xff]  }
 0x121   :  { %v352_v49 = vpop.f32.mrf.mxu0  ;;  %v395_v50 = vpop.f32.mrf.mxu1  ;;  %v2240_v44 = vld [vmem:[#allocation8 + $0x20c] ss:$16 sps:$4 sm:$0xff]  }
 0x122   :  { %v353_v53 = vadd.f32 %v352_v49, %v137_v45  ;;  %v396_v54 = vadd.f32 %v395_v50, %v145_v46  ;;  %v402_v5 = vmax.f32 %v351_v57, 0.0  ;;  %v404_v6 = vmax.f32 %v394_v58, 0.0  ;;  %v2241_v49 = vld [vmem:[#allocation8 + $0x1e8] ss:$16 sps:$4 sm:$0xff]  }
 0x123   :  { %v354_v51 = vpop.f32.mrf.mxu0  ;;  %v397_v52 = vpop.f32.mrf.mxu1  ;;  %v2244_v50 = vld [vmem:[#allocation8 + $0x3e8] ss:$16 sps:$4 sm:$0xff]  }
 0x124   :  { %v355_v55 = vadd.f32 %v354_v51, %v133_v47  ;;  %v398_v56 = vadd.f32 %v397_v52, %v141_v48  ;;  %v403_v1 = vmax.f32 %v353_v53, 0.0  ;;  %v405_v2 = vmax.f32 %v396_v54, 0.0  ;;  %v2243_v47 = vld [vmem:[#allocation8 + $0x1ec] ss:$16 sps:$4 sm:$0xff]   ;;  %v2247_v53 = vld [vmem:[#allocation8 + $0x1c8] ss:$16 sps:$4 sm:$0xff]  }
 0x125   :  { %v356_v59 = vpop.f32.mrf.mxu0  ;;  %v399_v60 = vpop.f32.mrf.mxu1  ;;  %v2246_v48 = vld [vmem:[#allocation8 + $0x3ec] ss:$16 sps:$4 sm:$0xff]   ;;  %v2250_v54 = vld [vmem:[#allocation8 + $0x3c8] ss:$16 sps:$4 sm:$0xff]  }
 0x126   :  { %v357_v61 = vadd.f32 %v356_v59, %v137_v45  ;;  %v400_v62 = vadd.f32 %v399_v60, %v145_v46  ;;  %v406_v63 = vmax.f32 %v355_v55, 0.0  ;;  %v408_v0 = vmax.f32 %v398_v56, 0.0  ;;  %v2235_v45 = vld [vmem:[#allocation8 + $0x8] ss:$16 sps:$4 sm:$0xff]   ;;  %v2249_v51 = vld [vmem:[#allocation8 + $0x1cc] ss:$16 sps:$4 sm:$0xff]  }
 0x127   :  { %v2238_v46 = vld [vmem:[#allocation8 + $0x208] ss:$16 sps:$4 sm:$0xff]   ;;  %v2252_v52 = vld [vmem:[#allocation8 + $0x3cc] ss:$16 sps:$4 sm:$0xff]  }
 0x128   :  { %v407_v3 = vmax.f32 %v357_v61, 0.0  ;;  %v409_v4 = vmax.f32 %v400_v62, 0.0  ;;  %v2540_v11 = vpack.c.bf16 %v406_v63, %v402_v5  ;;  %v2542_v12 = vpack.c.bf16 %v408_v0, %v404_v6  ;;  %v2255_v55 = vld [vmem:[#allocation8 + $0x1ac] ss:$16 sps:$4 sm:$0xff]   ;;  %v2253_v57 = vld [vmem:[#allocation8 + $0x1a8] ss:$16 sps:$4 sm:$0xff]  }
 0x129   :  { %v2258_v56 = vld [vmem:[#allocation8 + $0x3ac] ss:$16 sps:$4 sm:$0xff]   ;;  %v2256_v58 = vld [vmem:[#allocation8 + $0x3a8] ss:$16 sps:$4 sm:$0xff]  }
 0x12a   :  { %v411_v7 = vpack.c.bf16 %v407_v3, %v403_v1  ;;  %v413_v8 = vpack.c.bf16 %v409_v4, %v405_v2  ;;  %v2261_v59 = vld [vmem:[#allocation8 + $0x18c] ss:$16 sps:$4 sm:$0xff]   ;;  %v2259_v61 = vld [vmem:[#allocation8 + $0x188] ss:$16 sps:$4 sm:$0xff]  }
 0x12b   :  { %v2264_v60 = vld [vmem:[#allocation8 + $0x38c] ss:$16 sps:$4 sm:$0xff]   ;;  %v2262_v62 = vld [vmem:[#allocation8 + $0x388] ss:$16 sps:$4 sm:$0xff]  }
 0x12c   :  { %1236 = vmatprep.mubr.bf16.mxu0 %v411_v7  ;;  %1279 = vmatprep.mubr.bf16.mxu1 %v413_v8  ;;  %v2267_v63 = vld [vmem:[#allocation8 + $0x16c] ss:$16 sps:$4 sm:$0xff]   ;;  %v2265_v1 = vld [vmem:[#allocation8 + $0x168] ss:$16 sps:$4 sm:$0xff]  }
 0x12d   :  { %1237 = vmatmul.mubr.bf16.vlgmr.msra.gmra.mxu0 %v2540_v11  ;;  %1280 = vmatmul.mubr.bf16.vlgmr.msra.gmra.mxu1 %v2542_v12  ;;  %v2270_v0 = vld [vmem:[#allocation8 + $0x36c] ss:$16 sps:$4 sm:$0xff]   ;;  %v2268_v2 = vld [vmem:[#allocation8 + $0x368] ss:$16 sps:$4 sm:$0xff]  }
 0x12e   :  { %1291 = vmatpush1.bf16.msra.mxu0 %v2193_v9  ;;  %1334 = vmatpush1.bf16.msra.mxu1 %v2196_v10  ;;  %v2273_v3 = vld [vmem:[#allocation8 + $0x14c] ss:$16 sps:$4 sm:$0xff]   ;;  %v2271_v5 = vld [vmem:[#allocation8 + $0x148] ss:$16 sps:$4 sm:$0xff]  }
 0x12f   :  { %1322 = vmatprep.mubr.bf16.mxu0 %v411_v7  ;;  %1365 = vmatprep.mubr.bf16.mxu1 %v413_v8  ;;  %v2276_v4 = vld [vmem:[#allocation8 + $0x34c] ss:$16 sps:$4 sm:$0xff]   ;;  %v2274_v6 = vld [vmem:[#allocation8 + $0x348] ss:$16 sps:$4 sm:$0xff]  }
 0x130   :  { %1292 = vmatprep.subr.bf16.mxu0 %v2201_v13  ;;  %1335 = vmatprep.subr.bf16.mxu1 %v2204_v14  ;;  %v2279_v7 = vld [vmem:[#allocation8 + $0x12c] ss:$16 sps:$4 sm:$0xff]   ;;  %v2277_v9 = vld [vmem:[#allocation8 + $0x128] ss:$16 sps:$4 sm:$0xff]  }
 0x131   :  { %v2282_v8 = vld [vmem:[#allocation8 + $0x32c] ss:$16 sps:$4 sm:$0xff]   ;;  %v2280_v10 = vld [vmem:[#allocation8 + $0x328] ss:$16 sps:$4 sm:$0xff]  }
 0x132   :  { %1293 = vmatpush1.bf16.msra.mxu0 %v2199_v15  ;;  %1336 = vmatpush1.bf16.msra.mxu1 %v2202_v16  ;;  %v2285_v13 = vld [vmem:[#allocation8 + $0x10c] ss:$16 sps:$4 sm:$0xff]   ;;  %v2283_v15 = vld [vmem:[#allocation8 + $0x108] ss:$16 sps:$4 sm:$0xff]  }
 0x133   :  { %1294 = vmatprep.subr.bf16.mxu0 %v2207_v17  ;;  %1337 = vmatprep.subr.bf16.mxu1 %v2210_v18  ;;  %v2288_v14 = vld [vmem:[#allocation8 + $0x30c] ss:$16 sps:$4 sm:$0xff]   ;;  %v2286_v16 = vld [vmem:[#allocation8 + $0x308] ss:$16 sps:$4 sm:$0xff]  }
 0x134   :  { %v2289_v17 = vld [vmem:[#allocation10 + $0x78] sm:$0xff]  }
 0x135   :  { %v2290_v18 = vld [vmem:[#allocation10 + $0x38] sm:$0xff]  }
 0x136   :  { %1295 = vmatpush1.bf16.msra.mxu0 %v2205_v19  ;;  %1338 = vmatpush1.bf16.msra.mxu1 %v2208_v20  ;;  %v2291_v19 = vld [vmem:[#allocation10 + $0x70] sm:$0xff]  }
 0x137   :  { %1296 = vmatprep.subr.bf16.mxu0 %v2213_v21  ;;  %1339 = vmatprep.subr.bf16.mxu1 %v2216_v22  ;;  %v2292_v20 = vld [vmem:[#allocation10 + $0x30] sm:$0xff]   ;;  %v2293_v21 = vld [vmem:[#allocation10 + $0x68] sm:$0xff]  }
 0x138   :  { %v2294_v22 = vld [vmem:[#allocation10 + $0x28] sm:$0xff]  }
 0x13a   :  { %1297 = vmatpush1.bf16.msra.mxu0 %v2211_v23  ;;  %1340 = vmatpush1.bf16.msra.mxu1 %v2214_v24  ;;  %v2295_v23 = vld [vmem:[#allocation10 + $0x60] sm:$0xff]  }
 0x13b   :  { %1298 = vmatprep.subr.bf16.mxu0 %v2219_v25  ;;  %1341 = vmatprep.subr.bf16.mxu1 %v2222_v26  ;;  %v2296_v24 = vld [vmem:[#allocation10 + $0x20] sm:$0xff]   ;;  %v2297_v25 = vld [vmem:[#allocation10 + $0x58] sm:$0xff]  }
 0x13c   :  { %v2298_v26 = vld [vmem:[#allocation10 + $0x18] sm:$0xff]  }
 0x13e   :  { %1299 = vmatpush1.bf16.msra.mxu0 %v2217_v27  ;;  %1342 = vmatpush1.bf16.msra.mxu1 %v2220_v28  ;;  %v2299_v27 = vld [vmem:[#allocation10 + $0x50] sm:$0xff]   ;;  %v2305_v28 = vld [vmem:[#allocation10 + $0xf8] sm:$0xff]  }
 0x13f   :  { %1300 = vmatprep.subr.bf16.mxu0 %v2225_v29  ;;  %1343 = vmatprep.subr.bf16.mxu1 %v2228_v30  ;;  %v2307_v29 = vld [vmem:[#allocation10 + $0xf0] sm:$0xff]   ;;  %v2301_v30 = vld [vmem:[#allocation10 + $0x48] sm:$0xff]  }
 0x142   :  { %1301 = vmatpush1.bf16.msra.mxu0 %v2223_v31  ;;  %1344 = vmatpush1.bf16.msra.mxu1 %v2226_v32  ;;  %v2308_v31 = vld [vmem:[#allocation10 + $0xb0] sm:$0xff]   ;;  %v2309_v32 = vld [vmem:[#allocation10 + $0xe8] sm:$0xff]  }
 0x143   :  { %1302 = vmatprep.subr.bf16.mxu0 %v2231_v33  ;;  %1345 = vmatprep.subr.bf16.mxu1 %v2234_v34  ;;  %v2302_v33 = vld [vmem:[#allocation10 + $0x8] sm:$0xff]   ;;  %v2303_v34 = vld [vmem:[#allocation10 + $0x40] sm:$0xff]  }
 0x146   :  { %1303 = vmatpush1.bf16.msra.mxu0 %v2229_v35  ;;  %1346 = vmatpush1.bf16.msra.mxu1 %v2232_v42  ;;  %v2310_v35 = vld [vmem:[#allocation10 + $0xa8] sm:$0xff]   ;;  %v2311_v42 = vld [vmem:[#allocation10 + $0xe0] sm:$0xff]  }
 0x147   :  { %1304 = vmatprep.subr.bf16.mxu0 %v2237_v43  ;;  %1347 = vmatprep.subr.bf16.mxu1 %v2240_v44  ;;  %v2304_v43 = vld [vmem:[#allocation10] sm:$0xff]  }
 0x148   :  { %v2312_v44 = vld [vmem:[#allocation10 + $0xa0] sm:$0xff]  }
 0x14a   :  { %1305 = vmatpush1.bf16.msra.mxu0 %v2235_v45  ;;  %1348 = vmatpush1.bf16.msra.mxu1 %v2238_v46  ;;  %v2313_v45 = vld [vmem:[#allocation10 + $0xd8] sm:$0xff]  }
 0x14b   :  { %1306 = vmatprep.subr.bf16.mxu0 %v2243_v47  ;;  %1349 = vmatprep.subr.bf16.mxu1 %v2246_v48  ;;  %v2314_v46 = vld [vmem:[#allocation10 + $0x98] sm:$0xff]   ;;  %v2315_v47 = vld [vmem:[#allocation10 + $0xd0] sm:$0xff]  }
 0x14c   :  { %v2316_v48 = vld [vmem:[#allocation10 + $0x90] sm:$0xff]  }
 0x14e   :  { %1307 = vmatpush2.bf16.msra.mxu0 %v2241_v49  ;;  %1350 = vmatpush2.bf16.msra.mxu1 %v2244_v50  ;;  %v2317_v49 = vld [vmem:[#allocation10 + $0xc8] sm:$0xff]  }
 0x14f   :  { %1308 = vmatprep.subr.bf16.mxu0 %v2249_v51  ;;  %1351 = vmatprep.subr.bf16.mxu1 %v2252_v52  ;;  %v2318_v50 = vld [vmem:[#allocation10 + $0x88] sm:$0xff]   ;;  %v2319_v51 = vld [vmem:[#allocation10 + $0xc0] sm:$0xff]  }
 0x150   :  { %v2320_v52 = vld [vmem:[#allocation10 + $0x80] sm:$0xff]  }
 0x152   :  { %1309 = vmatpush2.bf16.msra.mxu0 %v2247_v53  ;;  %1352 = vmatpush2.bf16.msra.mxu1 %v2250_v54  ;;  %v542_v53 = vld [vmem:[%s2570_s4] sm:$0xf] }
 0x153   :  { %1310 = vmatprep.subr.bf16.mxu0 %v2255_v55  ;;  %1353 = vmatprep.subr.bf16.mxu1 %v2258_v56  ;;  %v551_v54 = vrot.slane %v542_v53, %v136_v38  ;;  %v547_v55 = vrot.slane %v542_v53, %v132_v40 }
 0x156   :  { %1311 = vmatpush2.bf16.msra.mxu0 %v2253_v57  ;;  %1354 = vmatpush2.bf16.msra.mxu1 %v2256_v58 }
 0x157   :  { %1312 = vmatprep.subr.bf16.mxu0 %v2261_v59  ;;  %1355 = vmatprep.subr.bf16.mxu1 %v2264_v60 }
 0x15a   :  { %1313 = vmatpush2.bf16.msra.mxu0 %v2259_v61  ;;  %1356 = vmatpush2.bf16.msra.mxu1 %v2262_v62 }
 0x15b   :  { %1314 = vmatprep.subr.bf16.mxu0 %v2267_v63  ;;  %1357 = vmatprep.subr.bf16.mxu1 %v2270_v0 }
 0x15e   :  { %1315 = vmatpush2.bf16.msra.mxu0 %v2265_v1  ;;  %1358 = vmatpush2.bf16.msra.mxu1 %v2268_v2 }
 0x15f   :  { %1316 = vmatprep.subr.bf16.mxu0 %v2273_v3  ;;  %1359 = vmatprep.subr.bf16.mxu1 %v2276_v4 }
 0x162   :  { %1317 = vmatpush2.bf16.msra.mxu0 %v2271_v5  ;;  %1360 = vmatpush2.bf16.msra.mxu1 %v2274_v6 }
 0x163   :  { %1318 = vmatprep.subr.bf16.mxu0 %v2279_v7  ;;  %1361 = vmatprep.subr.bf16.mxu1 %v2282_v8 }
 0x166   :  { %1319 = vmatpush2.bf16.msra.mxu0 %v2277_v9  ;;  %1362 = vmatpush2.bf16.msra.mxu1 %v2280_v10 }
 0x167   :  { %1320 = vmatprep.subr.bf16.mxu0 %v2285_v13  ;;  %1363 = vmatprep.subr.bf16.mxu1 %v2288_v14  ;;  %v559_v14 = vrot.slane %v542_v53, %v144_v39 }
 0x16a   :  { %1321 = vmatpush2.bf16.msra.mxu0 %v2283_v15  ;;  %1364 = vmatpush2.bf16.msra.mxu1 %v2286_v16  ;;  %v555_v15 = vrot.slane %v542_v53, %v140_v41 }
 0x16b   :  { %1991 = vmatprep.subr.bf16.mxu0 %v2289_v17  ;;  %2013 = vmatprep.subr.bf16.mxu1 %v2305_v28 }
 0x16d   :  { %1323 = vmatmul.mubr.bf16.vlgmr.msra.gmra.mxu0 %v2540_v11  ;;  %1366 = vmatmul.mubr.bf16.vlgmr.msra.gmra.mxu1 %v2542_v12  ;;  %v2306_v11 = vld [vmem:[#allocation10 + $0xb8] sm:$0xff]   ;;  %v2300_v12 = vld [vmem:[#allocation10 + $0x10] sm:$0xff]  }
 0x16e   :  { %1992 = vmatpush3.bf16.msra.mxu0 %v2290_v18  ;;  %2014 = vmatpush3.bf16.msra.mxu1 %v2306_v11 }
 0x16f   :  { %1993 = vmatprep.subr.bf16.mxu0 %v2291_v19  ;;  %2015 = vmatprep.subr.bf16.mxu1 %v2307_v29 }
 0x172   :  { %1994 = vmatpush3.bf16.msra.mxu0 %v2292_v20  ;;  %2016 = vmatpush3.bf16.msra.mxu1 %v2308_v31 }
 0x173   :  { %1995 = vmatprep.subr.bf16.mxu0 %v2293_v21  ;;  %2017 = vmatprep.subr.bf16.mxu1 %v2309_v32 }
 0x176   :  { %1996 = vmatpush3.bf16.msra.mxu0 %v2294_v22  ;;  %2018 = vmatpush3.bf16.msra.mxu1 %v2310_v35 }
 0x177   :  { %1997 = vmatprep.subr.bf16.mxu0 %v2295_v23  ;;  %2019 = vmatprep.subr.bf16.mxu1 %v2311_v42 }
 0x17a   :  { %1998 = vmatpush3.bf16.msra.mxu0 %v2296_v24  ;;  %2020 = vmatpush3.bf16.msra.mxu1 %v2312_v44 }
 0x17b   :  { %1999 = vmatprep.subr.bf16.mxu0 %v2297_v25  ;;  %2021 = vmatprep.subr.bf16.mxu1 %v2313_v45 }
 0x17e   :  { %2000 = vmatpush3.bf16.msra.mxu0 %v2298_v26  ;;  %2022 = vmatpush3.bf16.msra.mxu1 %v2314_v46 }
 0x17f   :  { %2001 = vmatprep.subr.bf16.mxu0 %v2299_v27  ;;  %2023 = vmatprep.subr.bf16.mxu1 %v2315_v47 }
 0x182   :  { %2002 = vmatpush3.bf16.msra.mxu0 %v2300_v12  ;;  %2024 = vmatpush3.bf16.msra.mxu1 %v2316_v48 }
 0x183   :  { %2003 = vmatprep.subr.bf16.mxu0 %v2301_v30  ;;  %2025 = vmatprep.subr.bf16.mxu1 %v2317_v49 }
 0x186   :  { %2004 = vmatpush3.bf16.msra.mxu0 %v2302_v33  ;;  %2026 = vmatpush3.bf16.msra.mxu1 %v2318_v50 }
 0x187   :  { %2005 = vmatprep.subr.bf16.mxu0 %v2303_v34  ;;  %2027 = vmatprep.subr.bf16.mxu1 %v2319_v51 }
 0x18a   :  { %2006 = vmatpush3.bf16.msra.mxu0 %v2304_v43  ;;  %2028 = vmatpush3.bf16.msra.mxu1 %v2320_v52  ;;  %v1958_v43 = vld [vmem:[%s2572_s6] ss:$0 sm:$0xff]  ;;  %s2467_s6 = smov [#allocation11]  }
 0x18b   :  { %s1783_s28 = sshll.u32 %s2467_s6, 4  ;;  %s1784_s28 = int_to_ptr.vmem [resolvable:$true] %s1783_s28 }
 0x18c   :  { %s2429_s29 = scalar_lea.vmem %s1784_s28, 256  ;;  %p2434_p12 = scmp.lt.s32.totalorder %s1784_s28, %s1784_s28 }
 0x18d   :  { %p2430_p11 = scmp.ne.s32.totalorder %s1784_s28, %s2429_s29  ;;  %p2435_p13 = scmp.lt.s32.totalorder %s2429_s29, %s2429_s29 }
 0x18f   :  { %p2436_p0 = por %p2435_p13, %p2434_p12 }
 0x191   :  { %p2437_p1 = pnand %p2436_p0, %p2430_p11 }
 0x1ed   :  { %v1238_v56 = vpop.f32.mrf.mxu0  ;;  %v1281_v57 = vpop.f32.mrf.mxu1 }
 0x1ee   :  { %v1239_v61 = vadd.f32 %v1238_v56, %v547_v55 }
 0x1ef   :  { %v1240_v58 = vpop.f32.mrf.mxu0  ;;  %v1283_v59 = vpop.f32.mrf.mxu1 }
 0x1f0   :  { %v1241_v60 = vadd.f32 %v1240_v58, %v551_v54  ;;  %v1282_v5 = vadd.f32 %v1281_v57, %v1239_v61 }
 0x1f1   :  { %v1242_v62 = vpop.f32.mrf.mxu0  ;;  %v1285_v63 = vpop.f32.mrf.mxu1 }
 0x1f2   :  { %v1243_v0 = vadd.f32 %v1242_v62, %v547_v55  ;;  %v1284_v2 = vadd.f32 %v1283_v59, %v1241_v60  ;;  %v1376_v40 = vmax.f32 %v1282_v5, 0.0 }
 0x1f3   :  { %v1244_v1 = vpop.f32.mrf.mxu0  ;;  %v1287_v6 = vpop.f32.mrf.mxu1 }
 0x1f4   :  { %v1286_v3 = vadd.f32 %v1285_v63, %v1243_v0  ;;  %v1245_v4 = vadd.f32 %v1244_v1, %v551_v54  ;;  %v1377_v8 = vmax.f32 %v1284_v2, 0.0 }
 0x1f6   :  { %v1288_v7 = vadd.f32 %v1287_v6, %v1245_v4  ;;  %v1380_v38 = vmax.f32 %v1286_v3, 0.0 }
 0x1f8   :  { %v1381_v9 = vmax.f32 %v1288_v7, 0.0  ;;  %v1384_v13 = vpack.c.bf16 %v1380_v38, %v1376_v40 }
 0x1fa   :  { %v1385_v10 = vpack.c.bf16 %v1381_v9, %v1377_v8 }
 0x1fc   :  { %1683 = vmatprep.mubr.bf16.mxu0 %v1385_v10  ;;  %v1772_v10 = vand.u32 127, %v130_v36 }
 0x1fd   :  { %1684 = vmatmul.mubr.bf16.vlgmr.msra.gmra.mxu0 %v1384_v13 }
 0x1fe   :  { %vm1773_vm3 = vcmp.lt.s32.totalorder %v1772_v10, 8 }
 0x22d   :  { %v1324_v16 = vpop.f32.mrf.mxu0  ;;  %v1367_v17 = vpop.f32.mrf.mxu1 }
 0x22e   :  { %v1325_v21 = vadd.f32 %v1324_v16, %v555_v15 }
 0x22f   :  { %v1326_v18 = vpop.f32.mrf.mxu0  ;;  %v1369_v19 = vpop.f32.mrf.mxu1 }
 0x230   :  { %v1327_v20 = vadd.f32 %v1326_v18, %v559_v14  ;;  %v1368_v11 = vadd.f32 %v1367_v17, %v1325_v21 }
 0x231   :  { %v1328_v22 = vpop.f32.mrf.mxu0  ;;  %v1371_v23 = vpop.f32.mrf.mxu1 }
 0x232   :  { %v1329_v24 = vadd.f32 %v1328_v22, %v555_v15  ;;  %v1370_v26 = vadd.f32 %v1369_v19, %v1327_v20  ;;  %v1378_v41 = vmax.f32 %v1368_v11, 0.0 }
 0x233   :  { %v1330_v25 = vpop.f32.mrf.mxu0  ;;  %v1373_v29 = vpop.f32.mrf.mxu1 }
 0x234   :  { %v1372_v27 = vadd.f32 %v1371_v23, %v1329_v24  ;;  %v1331_v28 = vadd.f32 %v1330_v25, %v559_v14  ;;  %v1379_v30 = vmax.f32 %v1370_v26, 0.0 }
 0x236   :  { %v1374_v12 = vadd.f32 %v1373_v29, %v1331_v28  ;;  %v1382_v39 = vmax.f32 %v1372_v27, 0.0 }
 0x238   :  { %v1383_v37 = vmax.f32 %v1374_v12, 0.0  ;;  %v1386_v32 = vpack.c.bf16 %v1382_v39, %v1378_v41 }
 0x23a   :  { %v1387_v31 = vpack.c.bf16 %v1383_v37, %v1379_v30 }
 0x23c   :  { %1724 = vmatprep.mubr.bf16.mxu1 %v1387_v31 }
 0x23d   :  { %1725 = vmatmul.mubr.bf16.vlgmr.msra.gmra.mxu1 %v1386_v32 }
 0x2bd   :  { %v2007_v33 = vpop.f32.mrf.mxu0 }
 0x2bf   :  { %v2008_v34 = vpop.f32.mrf.mxu0 }
 0x2c0   :  { %v2009_v42 = vadd.f32 %v2008_v34, %v2007_v33 }
 0x2c1   :  { %v2010_v35 = vpop.f32.mrf.mxu0 }
 0x2c2   :  { %v1686_v47 = vadd.f32 %v2009_v42, %v1958_v43 }
 0x2c3   :  { %v2011_v44 = vpop.f32.mrf.mxu0 }
 0x2c4   :  { %v2012_v48 = vadd.f32 %v2011_v44, %v2010_v35 }
 0x2c6   :  { %v1689_v53 = vadd.f32 %v2012_v48, %v1958_v43 }
 0x2fd   :  { %v2029_v45 = vpop.f32.mrf.mxu1 }
 0x2ff   :  { %v2030_v46 = vpop.f32.mrf.mxu1 }
 0x300   :  { %v2031_v49 = vadd.f32 %v2030_v46, %v2029_v45 }
 0x301   :  { %v2032_v50 = vpop.f32.mrf.mxu1 }
 0x302   :  { %v1727_v51 = vadd.f32 %v2031_v49, %v1686_v47 }
 0x303   :  { %v2033_v52 = vpop.f32.mrf.mxu1 }
 0x304   :  { %v1739_v54 = vand.u32 2147483647, %v1727_v51  ;;  %v2034_v55 = vadd.f32 %v2033_v52, %v2032_v50  ;;  %v1733_v9 = vmax.f32 %v1727_v51, 0.0  ;;  %vm1735_vm1 = vcmp.ne.f32.partialorder %v1727_v51, %v1727_v51 }
 0x306   :  { %v1741_v56 = vsub.f32 0.0, %v1739_v54  ;;  %v1730_v57 = vadd.f32 %v2034_v55, %v1689_v53 }
 0x308   :  { %v1743_v58 = vmul.f32 1.442695, %v1741_v56  ;;  %v1740_v59 = vand.u32 2147483647, %v1730_v57  ;;  %v1734_v18 = vmax.f32 %v1730_v57, 0.0  ;;  %vm1736_vm4 = vcmp.ne.f32.partialorder %v1730_v57, %v1730_v57 }
 0x30a   :  { %2321 = vpow2.f32 %v1743_v58  ;;  %v1742_v60 = vsub.f32 0.0, %v1740_v59 }
 0x30c   :  { %v1745_v61 = vmul.f32 1.442695, %v1742_v60 }
 0x30e   :  { %2323 = vpow2.f32 %v1745_v61 }
 0x317   :  { %v2322_v62 = vpop.eup %2321 }
 0x318   :  { %v1747_v63 = vadd.f32 1.0, %v2322_v62  ;;  %v1750_v2 = vmul.f32 -0.5, %v2322_v62  ;;  %v1753_v5 = vand.u32 2147483647, %v2322_v62 }
 0x31a   :  { %2325 = vlog2.f32 %v1747_v63  ;;  %v1751_v3 = vadd.f32 1.0, %v1750_v2  ;;  %vm1754_vm0 = vcmp.lt.f32.partialorder %v1753_v5, 0.0004427343 }
 0x31b   :  { %v2324_v0 = vpop.eup %2323 }
 0x31c   :  { %v1756_v1 = vadd.f32 1.0, %v2324_v0  ;;  %v1759_v4 = vmul.f32 -0.5, %v2324_v0  ;;  %v1752_v38 = vmul.f32 %v2322_v62, %v1751_v3  ;;  %v1762_v40 = vand.u32 2147483647, %v2324_v0 }
 0x31e   :  { %2327 = vlog2.f32 %v1756_v1  ;;  %v1760_v8 = vadd.f32 1.0, %v1759_v4  ;;  %vm1763_vm2 = vcmp.lt.f32.partialorder %v1762_v40, 0.0004427343 }
 0x320   :  { %v1761_v17 = vmul.f32 %v2324_v0, %v1760_v8 }
 0x327   :  { %v2326_v6 = vpop.eup %2325 }
 0x328   :  { %v1749_v7 = vmul.f32 0.6931472, %v2326_v6 }
 0x32a   :  { %v1755_v13 = vsel %vm1754_vm0, %v1752_v38, %v1749_v7 }
 0x32b   :  { %v2328_v14 = vpop.eup %2327  ;;  %v1765_v15 = vadd.f32 %v1755_v13, %v1733_v9 }
 0x32c   :  { %v1758_v16 = vmul.f32 0.6931472, %v2328_v14 }
 0x32d   :  { %v1767_v19 = vsel %vm1735_vm1, %v1727_v51, %v1765_v15 }
 0x32e   :  { %v1764_v20 = vsel %vm1763_vm2, %v1761_v17, %v1758_v16  ;;  %v1769_v21 = vadd.f32 1.0, %v1767_v19 }
 0x32f   :  { %v1766_v22 = vadd.f32 %v1764_v20, %v1734_v18 }
 0x330   :  { %v1774_v23 = vsel %vm1773_vm3, %v1769_v21, %v1727_v51 }
 0x331   :  { %v1768_v24 = vsel %vm1736_vm4, %v1730_v57, %v1766_v22  ;;  %1776 = vst [vmem:[#allocation11] sm:$0xff] %v1774_v23 }
 0x332   :  { %v1770_v36 = vadd.f32 1.0, %v1768_v24 }
 0x334   :  { %v1775_v25 = vsel %vm1773_vm3, %v1770_v36, %v1730_v57 }
 0x335   :  { %1777 = vst [vmem:[#allocation11 + $0x8] sm:$0xff] %v1775_v25 }
 0x336   :  { %2440 = shalt.err (!%p2437_p1)
}
 0x337   :  { %s2468_s30 = smov 128   ;;  %s2469_s8 = smov 8  }
 0x338   :  { %1789 = dma.vmem_to_hbm [thread:$0]  %s1784_s28, 256, %s2573_s7, [#allocation4], %s2468_s30, %s2468_s30, %s2469_s8  }
 0x339   :  { %2455 = dma.done.wait [#allocation4], 256  }
 0x33a   :  { %2456 = vsyncadd [#allocation4], 4294967040 }
 0x33b   :  { %1793 = vsyncpa [#allocation3], 1 }
 0x33c   :  { %1794 = vsyncpa [#allocation6], 1 }
 0x33d   :  { %1795 = vsyncpa [#allocation9], 1 }
 0x33e   :  { %1796 = vsyncpa [#allocation4], 1 }

</bundles_post_ra>
